<compile_context>
chip_gen: v6e
topology: v6e:2x2x1
jax: 0.10.0
libtpu: 0.0.40
codegen_flags: <defaults>
</compile_context>

<pallas_src>
import functools

import numpy as np
import jax
import jax.numpy as jnp
from jax import lax
from jax.experimental import pallas as pl
from jax.experimental.pallas import tpu as pltpu

EPS = 1e-5  # nn.GroupNorm default eps


@functools.lru_cache(maxsize=None)
def _roll_follows_jnp_convention_cached(device_key: str) -> bool:
    """Device probe of pltpu.roll's sign convention, cached per backend/device.

    True  -> pltpu.roll(x, s, axis) == jnp.roll(x, s, axis)   (out[i] = in[i-s])
    False -> opposite rotation                                 (out[i] = in[i+s])
    """
    del device_key  # cache key only

    def k(x_ref, o_ref):
        o_ref[...] = pltpu.roll(x_ref[...], 1, axis=1)

    x = jnp.arange(8 * 128, dtype=jnp.float32).reshape(8, 128)
    y = pl.pallas_call(k, out_shape=jax.ShapeDtypeStruct((8, 128), jnp.float32))(x)
    return bool(jnp.array_equal(y, jnp.roll(x, 1, axis=1)))


def _roll_follows_jnp_convention() -> bool:
    try:
        d = jax.devices()[0]
        key = f"{jax.default_backend()}:{getattr(d, 'device_kind', '')}"
    except Exception:
        key = "unknown"
    return _roll_follows_jnp_convention_cached(key)


def _num_parallel_cores() -> int:
    """Heuristic: 2 TensorCores per device on v4/v7-class parts, else 1."""
    try:
        kind = (getattr(jax.devices()[0], "device_kind", "") or "").lower()
        if ("v4" in kind) or ("v7" in kind) or ("tpu7" in kind):
            return 2
    except Exception:
        pass
    return 1


def _choose_batch_block(N, C, HW):
    """Images packed per grid step (along the lane axis).

    1-TC generations (v5e/v6e): fold as much of the batch as fits a VMEM
    working-set cap into one grid step.  Multi-TC generations (v4/v7x): keep
    >= 2 "parallel" grid steps so both cores get work.
    """
    if N <= 1:
        return 1
    if HW % 128 != 0:
        # Lane packing needs 128-aligned per-image lane slices for cheap
        # per-image GroupNorm stats.  TODO(synk): for real-mnist HW=36, pad HW
        # to 128 (or pack 4 images per 144 lanes) before entering the kernel.
        return 1
    per_img = C * HW * 4                       # f32 bytes per image
    cap = max(1, (8 * 1024 * 1024) // (64 * per_img))   # ~8 MiB working set
    cap = min(cap, 8)                          # keep kernel trace size bounded
    min_steps = 2 if _num_parallel_cores() >= 2 else 1
    best = 1
    for nb in range(1, N + 1):
        if N % nb == 0 and nb <= cap and N // nb >= min_steps:
            best = nb
    return best


def _ode_block_kernel(x_ref, mask_ref, gn_g_ref, gn_b_ref,
                      w1_ref, tp1_ref, b1_ref,
                      w2_ref, tp2_ref, b2_ref,
                      o_ref, *, C, H, W, nb, nsteps, roll_like_jnp):
    HW = H * W
    L = nb * HW

    gn_g = gn_g_ref[...]        # (3, C, 1)  GroupNorm gammas
    gn_b = gn_b_ref[...]        # (3, C, 1)  GroupNorm betas
    tp1 = tp1_ref[...]          # (C, L)     conv1 t-plane (tiled per image)
    b1 = b1_ref[...]            # (C, 1)
    tp2 = tp2_ref[...]
    b2 = b2_ref[...]

    shifts = [dh * W + dw for dh in (-1, 0, 1) for dw in (-1, 0, 1)]

    def roll_plus(y, s):
        # y'[..., p] = y[..., (p + s) % L]; wrap / cross-image lanes get masked.
        s = s % L
        if s == 0:
            return y
        shift = (L - s) if roll_like_jnp else s
        return pltpu.roll(y, shift, axis=y.ndim - 1)

    def group_norm(y, idx, relu):
        # GroupNorm(min(32, C), C) with C <= 32 -> one channel per group.
        # Two-pass (x - mean) statistics; ReLU fused into the epilogue.
        # Per-image stats via 128-aligned lane slices (no Mosaic reshapes).
        g = gn_g[idx]
        b = gn_b[idx]
        parts = []
        for bb in range(nb):
            yb = y[:, bb * HW:(bb + 1) * HW] if nb > 1 else y   # (C, HW)
            mean = jnp.mean(yb, axis=-1, keepdims=True)
            cen = yb - mean
            var = jnp.mean(cen * cen, axis=-1, keepdims=True)
            out = cen * (lax.rsqrt(var + EPS) * g) + b
            if relu:
                out = jnp.maximum(out, 0.0)
            parts.append(out)
        return parts[0] if nb == 1 else jnp.concatenate(parts, axis=-1)

    def concat_conv(t, y, w_ref, tp, bias):
        # ConcatConv2d(3x3, pad=1): 9 per-tap (C, C) x (C, L) matmuls
        # accumulated directly from rolled + masked operands — no (9C, L)
        # concat temp.  The constant-t input channel contributes t * t_plane.
        out = jnp.dot(w_ref[4], y, preferred_element_type=jnp.float32)  # center
        mi = 0
        for ti, s in enumerate(shifts):
            if ti == 4:
                continue
            ym = roll_plus(y, s) * mask_ref[mi]            # (C, L) * (1, L)
            out = out + jnp.dot(w_ref[ti], ym, preferred_element_type=jnp.float32)
            mi += 1
        return out + t * tp + bias

    def odefunc(t, y):
        h = group_norm(y, 0, relu=True)
        h = concat_conv(t, h, w1_ref, tp1, b1)
        h = group_norm(h, 1, relu=True)
        h = concat_conv(t, h, w2_ref, tp2, b2)
        h = group_norm(h, 2, relu=False)
        return h

    dt = jnp.float32(1.0 / nsteps)

    def rk4_step(i, y):
        # Incremental accumulation: never more than ~3 (C, L) tensors live.
        t = i.astype(jnp.float32) * dt
        k = odefunc(t, y)                                   # k1
        acc = y + (dt / 6.0) * k
        k = odefunc(t + 0.5 * dt, y + (0.5 * dt) * k)       # k2
        acc = acc + (dt / 3.0) * k
        k = odefunc(t + 0.5 * dt, y + (0.5 * dt) * k)       # k3
        acc = acc + (dt / 3.0) * k
        k = odefunc(t + dt, y + dt * k)                     # k4
        return acc + (dt / 6.0) * k

    y = lax.fori_loop(0, nsteps, rk4_step, x_ref[0], unroll=True)
    o_ref[0] = y


def ode_block_forward(x_nchw, params, *, nsteps=4, batch_block=None):
    """ODEBlock.forward: y(1) of dy/dt = odefunc(t, y), y(0) = x.  NCHW in/out."""
    N, C, H, W = x_nchw.shape
    if C > 32:
        # TODO(synk): multi-channel GroupNorm groups (C > 32) not implemented.
        raise NotImplementedError("GroupNorm path assumes one channel per group (C <= 32).")
    HW = H * W
    nb = batch_block if batch_block is not None else _choose_batch_block(N, C, HW)
    assert N % nb == 0, "batch_block must divide the batch size"
    G = N // nb
    L = nb * HW

    x = x_nchw.reshape(N, C, HW).astype(jnp.float32)
    # Pack nb images along the lane axis: image (g*nb + b) -> lanes [b*HW, (b+1)*HW).
    xg = x.reshape(G, nb, C, HW).transpose(0, 2, 1, 3).reshape(G, C, L)

    # Per-tap validity masks (9, HW); tap order = (dh, dw) row-major, matching
    # the in-kernel roll order and the per-tap weight layout.
    hh = jnp.arange(H, dtype=jnp.int32)[:, None]
    ww = jnp.arange(W, dtype=jnp.int32)[None, :]
    taps = []
    for dh in (-1, 0, 1):
        for dw in (-1, 0, 1):
            m = ((hh + dh >= 0) & (hh + dh < H) & (ww + dw >= 0) & (ww + dw < W))
            taps.append(m.reshape(HW))
    mask_taps = jnp.stack(taps).astype(jnp.float32)                 # (9, HW)
    # Non-center taps only (center mask is all ones); tiled along lanes.
    mask8 = jnp.concatenate([mask_taps[:4], mask_taps[5:]], axis=0)  # (8, HW)
    mask8 = jnp.tile(mask8, (1, nb))[:, None, :]                     # (8, 1, L)

    def prep_conv(w, b):
        w = w.astype(jnp.float32)                            # (C, C+1, 3, 3)
        # Per-tap weights over real channels, tap-major: (9, C_out, C_in).
        w_taps = w[:, 1:].transpose(2, 3, 0, 1).reshape(9, C, C)
        # Constant-t channel folded into a t-plane: conv contribution = t * tp.
        tp = w[:, 0].reshape(C, 9) @ mask_taps               # (C, HW)
        tp = jnp.tile(tp, (1, nb))                           # (C, L)
        return w_taps, tp, b.reshape(C, 1).astype(jnp.float32)

    wt1, tp1, b1 = prep_conv(params["w1"], params["b1"])
    wt2, tp2, b2 = prep_conv(params["w2"], params["b2"])

    gn_g = jnp.stack([params["g1"], params["g2"], params["g3"]]
                     ).reshape(3, C, 1).astype(jnp.float32)
    gn_b = jnp.stack([params["be1"], params["be2"], params["be3"]]
                     ).reshape(3, C, 1).astype(jnp.float32)

    kernel = functools.partial(
        _ode_block_kernel, C=C, H=H, W=W, nb=nb, nsteps=nsteps,
        roll_like_jnp=_roll_follows_jnp_convention())

    out = pl.pallas_call(
        kernel,
        out_shape=jax.ShapeDtypeStruct((G, C, L), jnp.float32),
        grid=(G,),
        in_specs=[
            pl.BlockSpec((1, C, L), lambda g: (g, 0, 0)),        # x (packed)
            pl.BlockSpec((8, 1, L), lambda g: (0, 0, 0)),        # boundary masks
            pl.BlockSpec((3, C, 1), lambda g: (0, 0, 0)),        # GN gamma
            pl.BlockSpec((3, C, 1), lambda g: (0, 0, 0)),        # GN beta
            pl.BlockSpec((9, C, C), lambda g: (0, 0, 0)),        # conv1 per-tap W
            pl.BlockSpec((C, L), lambda g: (0, 0)),              # conv1 t-plane
            pl.BlockSpec((C, 1), lambda g: (0, 0)),              # conv1 bias
            pl.BlockSpec((9, C, C), lambda g: (0, 0, 0)),        # conv2 per-tap W
            pl.BlockSpec((C, L), lambda g: (0, 0)),              # conv2 t-plane
            pl.BlockSpec((C, 1), lambda g: (0, 0)),              # conv2 bias
        ],
        out_specs=pl.BlockSpec((1, C, L), lambda g: (g, 0, 0)),
        compiler_params=pltpu.CompilerParams(
            dimension_semantics=("parallel",),
            vmem_limit_bytes=32 * 1024 * 1024),
    )(xg, mask8, gn_g, gn_b, wt1, tp1, b1, wt2, tp2, b2)

    # Unpack the lane-packed images back to NCHW.
    return out.reshape(G, C, nb, HW).transpose(0, 2, 1, 3).reshape(N, C, H, W)


# ---------------- pure-JAX reference (for correctness check) ----------------
def _odefunc_ref(t, x, p):
    def gn(y, g, b):
        mean = y.mean(axis=(2, 3), keepdims=True)
        var = ((y - mean) ** 2).mean(axis=(2, 3), keepdims=True)
        return ((y - mean) / jnp.sqrt(var + EPS)) * g[None, :, None, None] \
            + b[None, :, None, None]

    def cconv(t, y, w, b):
        tt = jnp.full((y.shape[0], 1, y.shape[2], y.shape[3]), t, y.dtype)
        yin = jnp.concatenate([tt, y], axis=1)
        out = lax.conv_general_dilated(
            yin, w, window_strides=(1, 1), padding=((1, 1), (1, 1)),
            dimension_numbers=("NCHW", "OIHW", "NCHW"))
        return out + b[None, :, None, None]

    out = gn(x, p["g1"], p["be1"])
    out = jnp.maximum(out, 0.0)
    out = cconv(t, out, p["w1"], p["b1"])
    out = gn(out, p["g2"], p["be2"])
    out = jnp.maximum(out, 0.0)
    out = cconv(t, out, p["w2"], p["b2"])
    out = gn(out, p["g3"], p["be3"])
    return out


def ode_block_ref(x, p, nsteps=4):
    dt = 1.0 / nsteps
    y = x.astype(jnp.float32)
    for i in range(nsteps):
        t = jnp.float32(i * dt)
        k1 = _odefunc_ref(t, y, p)
        k2 = _odefunc_ref(t + 0.5 * dt, y + 0.5 * dt * k1, p)
        k3 = _odefunc_ref(t + 0.5 * dt, y + 0.5 * dt * k2, p)
        k4 = _odefunc_ref(t + dt, y + dt * k3, p)
        y = y + (dt / 6.0) * (k1 + 2.0 * k2 + 2.0 * k3 + k4)
    return y


if __name__ == "__main__":
    key = jax.random.PRNGKey(0)
    N, C, H, W = 2, 4, 16, 16
    ks = jax.random.split(key, 5)
    x = jax.random.normal(ks[0], (N, C, H, W), jnp.float32)

    # Deterministic parameter init (GroupNorm: gamma=1, beta=0 like PyTorch).
    params = dict(
        g1=jnp.ones((C,), jnp.float32), be1=jnp.zeros((C,), jnp.float32),
        g2=jnp.ones((C,), jnp.float32), be2=jnp.zeros((C,), jnp.float32),
        g3=jnp.ones((C,), jnp.float32), be3=jnp.zeros((C,), jnp.float32),
        w1=0.1 * jax.random.normal(ks[1], (C, C + 1, 3, 3), jnp.float32),
        b1=0.05 * jax.random.normal(ks[2], (C,), jnp.float32),
        w2=0.1 * jax.random.normal(ks[3], (C, C + 1, 3, 3), jnp.float32),
        b2=0.05 * jax.random.normal(ks[4], (C,), jnp.float32),
    )

    ref = jax.block_until_ready(ode_block_ref(x, params, nsteps=4))

    # Auto block sizing (generation-aware).
    out = jax.block_until_ready(ode_block_forward(x, params, nsteps=4))
    np.testing.assert_allclose(np.asarray(out), np.asarray(ref),
                               rtol=1e-3, atol=1e-3)

    # Explicitly exercise both the one-image-per-step and the lane-packed path.
    out1 = jax.block_until_ready(
        ode_block_forward(x, params, nsteps=4, batch_block=1))
    np.testing.assert_allclose(np.asarray(out1), np.asarray(ref),
                               rtol=1e-3, atol=1e-3)

    out2 = jax.block_until_ready(
        ode_block_forward(x, params, nsteps=4, batch_block=2))
    np.testing.assert_allclose(np.asarray(out2), np.asarray(ref),
                               rtol=1e-3, atol=1e-3)

    print("KERNEL_OK")
</pallas_src>

<mosaic_0001>
module attributes {stable_mosaic.version = 11 : i64} {
  func.func @k(%arg0: memref<8x128xf32, #tpu.memory_space<vmem>>, %arg1: memref<8x128xf32, #tpu.memory_space<vmem>>) attributes {dimension_semantics = [], scalar_prefetch = 0 : i64, scratch_operands = 0 : i64, tpu.core_type = #tpu.core_type<tc>} {
    %c0 = arith.constant 0 : index
    %c0_0 = arith.constant 0 : index
    %0 = vector.load %arg0[%c0, %c0_0] : memref<8x128xf32, #tpu.memory_space<vmem>>, vector<8x128xf32>
    %c1_i32 = arith.constant 1 : i32
    %1 = tpu.dynamic_rotate %0 by %c1_i32 dim 1 : vector<8x128xf32>, i32 -> vector<8x128xf32>
    %c0_1 = arith.constant 0 : index
    %c0_2 = arith.constant 0 : index
    %2 = vector.load %arg1[%c0_1, %c0_2] : memref<8x128xf32, #tpu.memory_space<vmem>>, vector<8x128xf32>
    tpu.vector_store %arg1[%c0_1, %c0_2], %1 {strides = array<i32>} : memref<8x128xf32, #tpu.memory_space<vmem>>, vector<8x128xf32>,
    return
  }
}

</mosaic_0001>

<bundles_post_ra>
// kernel: tpu_custom_call.1
= control target key start
LH: loop header
LB: loop body
LE: loop exit
PB: predicated region body
PF: predicated region fallthrough
CT: control target
= control target key end

     0   :  { %6 = vsyncpa [#allocation3], 0  ;;  %s106_s0 = inlined_call_operand.hbm [shape: f32[8,128], index: 0, kind: input, shape index: {}]   ;;  %s107_s1 = inlined_call_operand.hbm [shape: f32[8,128], index: 1, kind: output, shape index: {}]  }
   0x1   :  { %7 = vsyncpa [#allocation4], 0  ;;  %s87_s6 = smov [#allocation2]  }
   0x2   :  { %s14_s7 = sshll.u32 %s87_s6, 4  ;;  %s15_s7 = int_to_ptr.vmem [resolvable:$true] %s14_s7 }
   0x3   :  { %s51_s8 = scalar_lea.vmem %s15_s7, 128  ;;  %p56_p1 = scmp.lt.s32.totalorder %s15_s7, %s15_s7 }
   0x4   :  { %p52_p0 = scmp.ne.s32.totalorder %s15_s7, %s51_s8  ;;  %p57_p2 = scmp.lt.s32.totalorder %s51_s8, %s51_s8 }
   0x6   :  { %p58_p3 = por %p57_p2, %p56_p1 }
   0x8   :  { %p59_p4 = pnand %p58_p3, %p52_p0 }
   0xa   :  { %62 = shalt.err (!%p59_p4)
}
   0xb   :  { %17 = dma.hbm_to_vmem [thread:$0]  %s106_s0, 128, %s15_s7, [#allocation3]  }
   0xc   :  { %83 = dma.done.wait [#allocation3], 128  }
   0xd   :  { %84 = vsyncadd [#allocation3], 4294967168  ;;  %v21_v0 = vld [vmem:[#allocation2] sm:$0xff]  ;;  %s88_s11 = smov 1   ;;  %s89_s12 = smov [#allocation5]  }
   0xe   :  { %22 = vrot.lane.b32.xlu0 %v21_v0, %s88_s11  ;;  %s31_s13 = sshll.u32 %s89_s12, 4  ;;  %s32_s13 = int_to_ptr.vmem [resolvable:$true] %s31_s13 }
   0xf   :  { %s63_s14 = scalar_lea.vmem %s32_s13, 128  ;;  %p68_p6 = scmp.lt.s32.totalorder %s32_s13, %s32_s13 }
  0x10   :  { %p64_p5 = scmp.ne.s32.totalorder %s32_s13, %s63_s14  ;;  %p69_p7 = scmp.lt.s32.totalorder %s63_s14, %s63_s14 }
  0x12   :  { %p70_p8 = por %p69_p7, %p68_p6 }
  0x14   :  { %p71_p9 = pnand %p70_p8, %p64_p5 }
  0x80   :  { %v23_v1 = vpop.permute.xlu0 %22 }
  0x81   :  { %24 = vst [vmem:[#allocation5] sm:$0xff] %v23_v1 }
  0x82   :  { %74 = shalt.err (!%p71_p9)
}
  0x83   :  { %34 = dma.vmem_to_hbm [thread:$0]  %s32_s13, 128, %s107_s1, [#allocation4]  }
  0x84   :  { %85 = dma.done.wait [#allocation4], 128  }
  0x85   :  { %86 = vsyncadd [#allocation4], 4294967168 }
  0x86   :  { %38 = vsyncpa [#allocation3], 1 }
  0x87   :  { %39 = vsyncpa [#allocation4], 1 }

</bundles_post_ra>
